<compile_context>
chip_gen: v5e
topology: v5e:2x2
jax: 0.10.0
libtpu: 0.0.40
codegen_flags: <defaults>
</compile_context>

<pallas_src>
import math

import jax
import jax.numpy as jnp
from jax.experimental import pallas as pl
from jax.experimental.pallas import tpu as pltpu

_LANE = 128
_SUBLANE = 8


def _round_up(x: int, m: int) -> int:
    return (x + m - 1) // m * m


def _elu(x):
    # ELU(alpha=1) with a single transcendental.  min() keeps the dead branch
    # finite (no exp overflow for large positive x).
    return jnp.where(x > 0, x, jnp.exp(jnp.minimum(x, 0.0)) - 1.0)


def _actor_kernel(state_ref, mask_ref,
                  w1_ref, b1_ref, w2_ref, b2_ref, w3_ref, b3_ref,
                  out_ref):
    # fc1 + ELU (bf16 MXU inputs, f32 accumulation, f32 elementwise math).
    x = state_ref[...].astype(jnp.bfloat16)
    h1 = _elu(jnp.dot(x, w1_ref[...],
                      preferred_element_type=jnp.float32) + b1_ref[...])
    # fc2 + ELU
    h2 = _elu(jnp.dot(h1.astype(jnp.bfloat16), w2_ref[...],
                      preferred_element_type=jnp.float32) + b2_ref[...])
    # fc3 -> logits / temp (1/temp is folded into w3/b3 at prepare time).
    z = jnp.dot(h2.astype(jnp.bfloat16), w3_ref[...],
                preferred_element_type=jnp.float32) + b3_ref[...]

    # Mask penalty.  PyTorch adds -1e9 *before* the /temp; adding the unscaled
    # -1e9 here drives exp() to exactly 0 either way, so probabilities match.
    mask = mask_ref[...]                       # (TB, O) f32 in {0, 1}
    z = z + (1.0 - mask) * (-1.0e9)

    # Numerically stable softmax over the true-width action axis.  Exact
    # division so each row sums to 1 at f32 precision.
    m = jnp.max(z, axis=1, keepdims=True)
    e = jnp.exp(z - m)
    p = e / jnp.sum(e, axis=1, keepdims=True)

    out_ref[...] = p + mask * 1e-9


def prepare_params(params, temperature=None):
    """Cast matmul weights to bf16, pad the hidden dim to a lane multiple, and
    fold 1/temperature (default: sqrt(output_dim), as in the module) into fc3.
    Run once; reuse the result across forward calls."""
    w1, b1, w2, b2, w3, b3 = params
    S, F = w1.shape
    O = w3.shape[1]
    Fp = _round_up(F, _LANE)
    temp = math.sqrt(O) if temperature is None else float(temperature)
    inv_t = 1.0 / temp

    def pad2(a, r, c, dtype):
        out = jnp.zeros((r, c), dtype)
        return out.at[:a.shape[0], :a.shape[1]].set(a.astype(dtype))

    # Padded hidden lanes stay exactly 0 through ELU (b pads are 0), so they
    # never contribute to the logits.
    return (
        pad2(w1, S, Fp, jnp.bfloat16),          pad2(b1, 1, Fp, jnp.float32),
        pad2(w2, Fp, Fp, jnp.bfloat16),         pad2(b2, 1, Fp, jnp.float32),
        pad2(w3 * inv_t, Fp, O, jnp.bfloat16),  pad2(b3 * inv_t, 1, O, jnp.float32),
    )


def _choose_batch_tile(B, max_batch_tile):
    # Tiny batches: one block equal to the full batch (block dim == array dim
    # is always legal).  Otherwise split into >= 2 blocks so both v7x
    # TensorCores get work, rounded to 8 sublanes, capped by max_batch_tile.
    if B <= _SUBLANE:
        return B
    return min(max_batch_tile, _round_up(pl.cdiv(B, 2), _SUBLANE))


def actor_nn_forward(state, action_mask, prepared_params, max_batch_tile=512):
    """state: (B, S) float; action_mask: (B, O) bool/0-1. Returns (B, O) f32.

    Temperature is baked into prepared_params (see prepare_params).  Like the
    PyTorch module, assumes every row has >= 1 valid action.
    """
    w1p, b1p, w2p, b2p, w3p, b3p = prepared_params
    S, Fp = w1p.shape
    O = w3p.shape[1]
    B = state.shape[0]
    assert state.shape == (B, S)
    assert action_mask.shape == (B, O)

    # Only per-call host prep: bool -> f32 {0,1} mask (tiny (B, O) stream).
    state_f = state.astype(jnp.float32)        # matches PyTorch state.float()
    mask_f = action_mask.astype(jnp.float32)

    TB = _choose_batch_tile(B, max_batch_tile)
    grid = (pl.cdiv(B, TB),)                   # ragged last block handled by Pallas

    row_spec = lambda cols: pl.BlockSpec((TB, cols), lambda i: (i, 0))
    const_spec = lambda shape: pl.BlockSpec(shape, lambda i: (0, 0))

    return pl.pallas_call(
        _actor_kernel,
        out_shape=jax.ShapeDtypeStruct((B, O), jnp.float32),
        grid=grid,
        in_specs=[
            row_spec(S),              # state (TB, S)  f32 -> bf16 in kernel
            row_spec(O),              # mask  (TB, O)  f32 {0,1}
            const_spec((S, Fp)),      # W1 bf16, VMEM resident across the grid
            const_spec((1, Fp)),      # b1 f32
            const_spec((Fp, Fp)),     # W2 bf16
            const_spec((1, Fp)),      # b2 f32
            const_spec((Fp, O)),      # W3 bf16 (1/temp folded)
            const_spec((1, O)),       # b3 f32  (1/temp folded)
        ],
        out_specs=row_spec(O),        # probs (TB, O) f32
        compiler_params=pltpu.CompilerParams(
            dimension_semantics=("parallel",)),
    )(state_f, mask_f, w1p, b1p, w2p, b2p, w3p, b3p)


def init_params(key, state_dim, output_dim, fc_dim=None):
    """Deterministic synthetic parameters (shapes match the nn.Linear layers)."""
    fc_dim = 4 * state_dim if fc_dim is None else fc_dim
    k1, k2, k3, k4, k5, k6 = jax.random.split(key, 6)
    s1 = 1.0 / math.sqrt(state_dim)
    s2 = 1.0 / math.sqrt(fc_dim)
    # Stored as (in, out) so the kernel does x @ W directly (== x @ W_torch.T).
    w1 = jax.random.uniform(k1, (state_dim, fc_dim), jnp.float32, -s1, s1)
    b1 = jax.random.uniform(k2, (1, fc_dim), jnp.float32, -s1, s1)
    w2 = jax.random.uniform(k3, (fc_dim, fc_dim), jnp.float32, -s2, s2)
    b2 = jax.random.uniform(k4, (1, fc_dim), jnp.float32, -s2, s2)
    w3 = jax.random.uniform(k5, (fc_dim, output_dim), jnp.float32, -s2, s2)
    b3 = jax.random.uniform(k6, (1, output_dim), jnp.float32, -s2, s2)
    return (w1, b1, w2, b2, w3, b3)


def _reference(state, action_mask, params, temperature=None,
               matmul_dtype=jnp.float32):
    """Pure-JAX reference. matmul_dtype=bf16 mirrors the kernel's MXU precision."""
    w1, b1, w2, b2, w3, b3 = params
    temp = math.sqrt(w3.shape[1]) if temperature is None else temperature
    elu = lambda x: jnp.where(x > 0, x, jnp.expm1(x))
    dot = lambda a, w: jnp.dot(a.astype(matmul_dtype), w.astype(matmul_dtype),
                               preferred_element_type=jnp.float32)
    x = elu(dot(state, w1) + b1)
    x = elu(dot(x, w2) + b2)
    logits = dot(x, w3) + b3
    mask = action_mask.astype(jnp.float32)
    logits = logits + (1.0 - mask) * (-1.0e9)
    p = jax.nn.softmax(logits / temp, axis=1)
    return p + mask * 1e-9


if __name__ == "__main__":
    key = jax.random.PRNGKey(0)
    kp, ks, km = jax.random.split(key, 3)

    B, state_dim, output_dim = 8, 32, 16
    fc_dim = 4 * state_dim  # 128

    params = init_params(kp, state_dim, output_dim, fc_dim)
    prepared = prepare_params(params)           # default temp = sqrt(16) = 4

    state = jax.random.normal(ks, (B, state_dim), jnp.float32)
    action_mask = jax.random.uniform(km, (B, output_dim)) > 0.3
    action_mask = action_mask.at[:, 0].set(True)   # >= 1 valid action per row

    out = jax.block_until_ready(actor_nn_forward(state, action_mask, prepared))
    assert out.shape == (B, output_dim)

    # Matched-precision reference (bf16 matmuls, like the kernel): tight check.
    ref_bf16 = _reference(state, action_mask, params, matmul_dtype=jnp.bfloat16)
    assert jnp.allclose(out, ref_bf16, atol=1e-3, rtol=0), "mismatch vs bf16 reference"
    # Full-f32 reference (PyTorch semantics): loose check (bf16 MXU inputs).
    ref_f32 = _reference(state, action_mask, params)
    assert jnp.allclose(out, ref_f32, atol=1e-2, rtol=0), "mismatch vs f32 reference"
    # Probabilities sum to ~1 (exact softmax division; + tiny mask * 1e-9).
    assert jnp.allclose(jnp.sum(out, axis=1), 1.0, atol=1e-3)

    # Second call: grid > 1 and a ragged (partially filled) last batch block.
    B2 = 300
    ks2, km2 = jax.random.split(jax.random.PRNGKey(1))
    state2 = jax.random.normal(ks2, (B2, state_dim), jnp.float32)
    mask2 = jax.random.uniform(km2, (B2, output_dim)) > 0.3
    mask2 = mask2.at[:, 0].set(True)
    out2 = jax.block_until_ready(actor_nn_forward(state2, mask2, prepared))
    assert out2.shape == (B2, output_dim)
    assert jnp.allclose(out2, _reference(state2, mask2, params,
                                         matmul_dtype=jnp.bfloat16),
                        atol=1e-3, rtol=0), "mismatch vs bf16 reference (tiled)"
    assert jnp.allclose(out2, _reference(state2, mask2, params),
                        atol=1e-2, rtol=0), "mismatch vs f32 reference (tiled)"
    assert jnp.allclose(jnp.sum(out2, axis=1), 1.0, atol=1e-3)

    print("KERNEL_OK")
</pallas_src>

<mosaic_0001>
module attributes {stable_mosaic.version = 11 : i64} {
  func.func @_actor_kernel(%arg0: i32, %arg1: memref<8x32xf32, #tpu.memory_space<vmem>>, %arg2: memref<8x16xf32, #tpu.memory_space<vmem>>, %arg3: memref<32x128xbf16, #tpu.memory_space<vmem>>, %arg4: memref<1x128xf32, #tpu.memory_space<vmem>>, %arg5: memref<128x128xbf16, #tpu.memory_space<vmem>>, %arg6: memref<1x128xf32, #tpu.memory_space<vmem>>, %arg7: memref<128x16xbf16, #tpu.memory_space<vmem>>, %arg8: memref<1x16xf32, #tpu.memory_space<vmem>>, %arg9: memref<8x16xf32, #tpu.memory_space<vmem>>) attributes {dimension_semantics = [#tpu.dimension_semantics<parallel>], iteration_bounds = array<i64: 1>, scalar_prefetch = 0 : i64, scratch_operands = 0 : i64, tpu.core_type = #tpu.core_type<tc>, window_params = [{transform_indices = @transform_0, window_bounds = array<i64: 8, 32>}, {transform_indices = @transform_1, window_bounds = array<i64: 8, 16>}, {pipeline_mode = #tpu.pipeline_mode<synchronous>, transform_indices = @transform_2, window_bounds = array<i64: 32, 128>}, {pipeline_mode = #tpu.pipeline_mode<synchronous>, transform_indices = @transform_3, window_bounds = array<i64: 1, 128>}, {pipeline_mode = #tpu.pipeline_mode<synchronous>, transform_indices = @transform_4, window_bounds = array<i64: 128, 128>}, {pipeline_mode = #tpu.pipeline_mode<synchronous>, transform_indices = @transform_5, window_bounds = array<i64: 1, 128>}, {pipeline_mode = #tpu.pipeline_mode<synchronous>, transform_indices = @transform_6, window_bounds = array<i64: 128, 16>}, {pipeline_mode = #tpu.pipeline_mode<synchronous>, transform_indices = @transform_7, window_bounds = array<i64: 1, 16>}, {transform_indices = @transform_8, window_bounds = array<i64: 8, 16>}]} {
    %c0 = arith.constant 0 : index
    %c0_0 = arith.constant 0 : index
    %0 = vector.load %arg1[%c0, %c0_0] : memref<8x32xf32, #tpu.memory_space<vmem>>, vector<8x32xf32>
    %1 = arith.truncf %0 : vector<8x32xf32> to vector<8x32xbf16>
    %c0_1 = arith.constant 0 : index
    %c0_2 = arith.constant 0 : index
    %2 = vector.load %arg3[%c0_1, %c0_2] : memref<32x128xbf16, #tpu.memory_space<vmem>>, vector<32x128xbf16>
    %cst = arith.constant dense<0.000000e+00> : vector<8x128xf32>
    %3 = tpu.matmul %1, %2, %cst {dimension_numbers = #tpu.dot_dimension_numbers<[1], [0], [0], [1], [0, 0, 1, 1], [], []>} : vector<8x32xbf16>, vector<32x128xbf16>, vector<8x128xf32> -> vector<8x128xf32>
    %c0_3 = arith.constant 0 : index
    %c0_4 = arith.constant 0 : index
    %4 = vector.load %arg4[%c0_3, %c0_4] : memref<1x128xf32, #tpu.memory_space<vmem>>, vector<1x128xf32>
    %5 = vector.broadcast %4 : vector<1x128xf32> to vector<8x128xf32>
    %6 = arith.addf %3, %5 : vector<8x128xf32>
    %cst_5 = arith.constant 0.000000e+00 : f32
    %7 = vector.broadcast %cst_5 : f32 to vector<8x128xf32>
    %8 = arith.cmpf ogt, %6, %7 : vector<8x128xf32>
    %cst_6 = arith.constant 0.000000e+00 : f32
    %9 = vector.broadcast %cst_6 : f32 to vector<8x128xf32>
    %10 = arith.minimumf %6, %9 : vector<8x128xf32>
    %11 = math.exp %10 : vector<8x128xf32>
    %cst_7 = arith.constant 1.000000e+00 : f32
    %12 = vector.broadcast %cst_7 : f32 to vector<8x128xf32>
    %13 = arith.subf %11, %12 : vector<8x128xf32>
    %14 = arith.select %8, %6, %13 : vector<8x128xi1>, vector<8x128xf32>
    %15 = arith.truncf %14 : vector<8x128xf32> to vector<8x128xbf16>
    %c0_8 = arith.constant 0 : index
    %c0_9 = arith.constant 0 : index
    %16 = vector.load %arg5[%c0_8, %c0_9] : memref<128x128xbf16, #tpu.memory_space<vmem>>, vector<128x128xbf16>
    %cst_10 = arith.constant dense<0.000000e+00> : vector<8x128xf32>
    %17 = tpu.matmul %15, %16, %cst_10 {dimension_numbers = #tpu.dot_dimension_numbers<[1], [0], [0], [1], [0, 0, 1, 1], [], []>} : vector<8x128xbf16>, vector<128x128xbf16>, vector<8x128xf32> -> vector<8x128xf32>
    %c0_11 = arith.constant 0 : index
    %c0_12 = arith.constant 0 : index
    %18 = vector.load %arg6[%c0_11, %c0_12] : memref<1x128xf32, #tpu.memory_space<vmem>>, vector<1x128xf32>
    %19 = vector.broadcast %18 : vector<1x128xf32> to vector<8x128xf32>
    %20 = arith.addf %17, %19 : vector<8x128xf32>
    %cst_13 = arith.constant 0.000000e+00 : f32
    %21 = vector.broadcast %cst_13 : f32 to vector<8x128xf32>
    %22 = arith.cmpf ogt, %20, %21 : vector<8x128xf32>
    %cst_14 = arith.constant 0.000000e+00 : f32
    %23 = vector.broadcast %cst_14 : f32 to vector<8x128xf32>
    %24 = arith.minimumf %20, %23 : vector<8x128xf32>
    %25 = math.exp %24 : vector<8x128xf32>
    %cst_15 = arith.constant 1.000000e+00 : f32
    %26 = vector.broadcast %cst_15 : f32 to vector<8x128xf32>
    %27 = arith.subf %25, %26 : vector<8x128xf32>
    %28 = arith.select %22, %20, %27 : vector<8x128xi1>, vector<8x128xf32>
    %29 = arith.truncf %28 : vector<8x128xf32> to vector<8x128xbf16>
    %c0_16 = arith.constant 0 : index
    %c0_17 = arith.constant 0 : index
    %30 = vector.load %arg7[%c0_16, %c0_17] : memref<128x16xbf16, #tpu.memory_space<vmem>>, vector<128x16xbf16>
    %cst_18 = arith.constant dense<0.000000e+00> : vector<8x16xf32>
    %31 = tpu.matmul %29, %30, %cst_18 {dimension_numbers = #tpu.dot_dimension_numbers<[1], [0], [0], [1], [0, 0, 1, 1], [], []>} : vector<8x128xbf16>, vector<128x16xbf16>, vector<8x16xf32> -> vector<8x16xf32>
    %c0_19 = arith.constant 0 : index
    %c0_20 = arith.constant 0 : index
    %32 = vector.load %arg8[%c0_19, %c0_20] : memref<1x16xf32, #tpu.memory_space<vmem>>, vector<1x16xf32>
    %33 = vector.broadcast %32 : vector<1x16xf32> to vector<8x16xf32>
    %34 = arith.addf %31, %33 : vector<8x16xf32>
    %c0_21 = arith.constant 0 : index
    %c0_22 = arith.constant 0 : index
    %35 = vector.load %arg2[%c0_21, %c0_22] : memref<8x16xf32, #tpu.memory_space<vmem>>, vector<8x16xf32>
    %cst_23 = arith.constant 1.000000e+00 : f32
    %36 = vector.broadcast %cst_23 : f32 to vector<8x16xf32>
    %37 = arith.subf %36, %35 : vector<8x16xf32>
    %cst_24 = arith.constant -1.000000e+09 : f32
    %38 = vector.broadcast %cst_24 : f32 to vector<8x16xf32>
    %39 = arith.mulf %37, %38 : vector<8x16xf32>
    %40 = arith.addf %34, %39 : vector<8x16xf32>
    %cst_25 = arith.constant dense<0xFF800000> : vector<8xf32>
    %41 = vector.multi_reduction <maximumf>, %40, %cst_25 [1] : vector<8x16xf32> to vector<8xf32>
    %42 = vector.shape_cast %41 : vector<8xf32> to vector<8x1xf32>
    %43 = vector.broadcast %42 : vector<8x1xf32> to vector<8x16xf32>
    %44 = arith.subf %40, %43 : vector<8x16xf32>
    %45 = math.exp %44 : vector<8x16xf32>
    %cst_26 = arith.constant dense<0.000000e+00> : vector<8xf32>
    %46 = vector.multi_reduction <add>, %45, %cst_26 [1] : vector<8x16xf32> to vector<8xf32>
    %47 = vector.shape_cast %46 : vector<8xf32> to vector<8x1xf32>
    %48 = vector.broadcast %47 : vector<8x1xf32> to vector<8x16xf32>
    %49 = arith.divf %45, %48 : vector<8x16xf32>
    %cst_27 = arith.constant 9.99999971E-10 : f32
    %50 = vector.broadcast %cst_27 : f32 to vector<8x16xf32>
    %51 = arith.mulf %35, %50 : vector<8x16xf32>
    %52 = arith.addf %49, %51 : vector<8x16xf32>
    %c0_28 = arith.constant 0 : index
    %c0_29 = arith.constant 0 : index
    %53 = vector.load %arg9[%c0_28, %c0_29] : memref<8x16xf32, #tpu.memory_space<vmem>>, vector<8x16xf32>
    tpu.vector_store %arg9[%c0_28, %c0_29], %52 {strides = array<i32>} : memref<8x16xf32, #tpu.memory_space<vmem>>, vector<8x16xf32>,
    return
  }
  func.func @transform_0(%arg0: i32) -> (i32, i32) {
    %c0_i32 = arith.constant 0 : i32
    %c0_i32_0 = arith.constant 0 : i32
    return %arg0, %c0_i32 : i32, i32
  }
  func.func @transform_1(%arg0: i32) -> (i32, i32) {
    %c0_i32 = arith.constant 0 : i32
    %c0_i32_0 = arith.constant 0 : i32
    return %arg0, %c0_i32 : i32, i32
  }
  func.func @transform_2(%arg0: i32) -> (i32, i32) {
    %c0_i32 = arith.constant 0 : i32
    %c0_i32_0 = arith.constant 0 : i32
    %c0_i32_1 = arith.constant 0 : i32
    return %c0_i32, %c0_i32_0 : i32, i32
  }
  func.func @transform_3(%arg0: i32) -> (i32, i32) {
    %c0_i32 = arith.constant 0 : i32
    %c0_i32_0 = arith.constant 0 : i32
    %c0_i32_1 = arith.constant 0 : i32
    return %c0_i32, %c0_i32_0 : i32, i32
  }
  func.func @transform_4(%arg0: i32) -> (i32, i32) {
    %c0_i32 = arith.constant 0 : i32
    %c0_i32_0 = arith.constant 0 : i32
    %c0_i32_1 = arith.constant 0 : i32
    return %c0_i32, %c0_i32_0 : i32, i32
  }
  func.func @transform_5(%arg0: i32) -> (i32, i32) {
    %c0_i32 = arith.constant 0 : i32
    %c0_i32_0 = arith.constant 0 : i32
    %c0_i32_1 = arith.constant 0 : i32
    return %c0_i32, %c0_i32_0 : i32, i32
  }
  func.func @transform_6(%arg0: i32) -> (i32, i32) {
    %c0_i32 = arith.constant 0 : i32
    %c0_i32_0 = arith.constant 0 : i32
    %c0_i32_1 = arith.constant 0 : i32
    return %c0_i32, %c0_i32_0 : i32, i32
  }
  func.func @transform_7(%arg0: i32) -> (i32, i32) {
    %c0_i32 = arith.constant 0 : i32
    %c0_i32_0 = arith.constant 0 : i32
    %c0_i32_1 = arith.constant 0 : i32
    return %c0_i32, %c0_i32_0 : i32, i32
  }
  func.func @transform_8(%arg0: i32) -> (i32, i32) {
    %c0_i32 = arith.constant 0 : i32
    %c0_i32_0 = arith.constant 0 : i32
    return %arg0, %c0_i32 : i32, i32
  }
}

</mosaic_0001>

<bundles_post_ra>
// kernel: tpu_custom_call.1
= control target key start
LH: loop header
LB: loop body
LE: loop exit
PB: predicated region body
PF: predicated region fallthrough
CT: control target
= control target key end

     0   :  { %13 = vsyncpa [#allocation3], 0  ;;  %s635_s0 = inlined_call_operand.vmem [shape: f32[8,32], index: 0, kind: input, shape index: {}]   ;;  %s636_s1 = inlined_call_operand.hbm [shape: f32[8,16], index: 1, kind: input, shape index: {}]   ;;  %s637_s2 = inlined_call_operand.hbm [shape: bf16[32,128], index: 2, kind: input, shape index: {}]   ;;  %s638_s3 = inlined_call_operand.vmem [shape: f32[1,128], index: 3, kind: input, shape index: {}]   ;;  %s639_s4 = inlined_call_operand.vmem [shape: bf16[128,128], index: 4, kind: input, shape index: {}]   ;;  %s640_s5 = inlined_call_operand.vmem [shape: f32[1,128], index: 5, kind: input, shape index: {}]   ;;  %s641_s6 = inlined_call_operand.vmem [shape: bf16[128,16], index: 6, kind: input, shape index: {}]   ;;  %s642_s7 = inlined_call_operand.vmem [shape: f32[1,16], index: 7, kind: input, shape index: {}]   ;;  %s643_s8 = inlined_call_operand.hbm [shape: f32[8,16], index: 8, kind: output, shape index: {}]  }
   0x1   :  { %14 = vsyncpa [#allocation6], 0 }
   0x2   :  { %15 = vsyncpa [#allocation4], 0  ;;  %s23_s29 = sshll.u32 %s636_s1, 4  ;;  %s513_s30 = smov [#allocation2]   ;;  %s24_s29 = int_to_ptr.hbm [resolvable:$true] %s23_s29 }
   0x3   :  { %s25_s9 = sshll.u32 %s513_s30, 4  ;;  %s33_s12 = sshll.u32 %s637_s2, 4  ;;  %s26_s9 = int_to_ptr.vmem [resolvable:$true] %s25_s9  ;;  %s34_s12 = int_to_ptr.hbm [resolvable:$true] %s33_s12 }
   0x4   :  { %28 = dma.hbm_to_vmem [thread:$0]  %s24_s29, 128, %s26_s9, [#allocation3]  }
   0x5   :  { %s514_s13 = smov [#allocation5]   ;;  %s515_s15 = smov 64  }
   0x6   :  { %s35_s14 = sshll.u32 %s514_s13, 4  ;;  %s516_s16 = smov 4   ;;  %s36_s14 = int_to_ptr.vmem [resolvable:$true] %s35_s14 }
   0x7   :  { %41 = dma.hbm_to_vmem [thread:$0]  %s34_s12, 256, %s36_s14, [#allocation6], %s515_s15, %s515_s15, %s516_s16  }
   0x8   :  { %507 = dma.done.wait [#allocation3], 128  }
   0x9   :  { %508 = vsyncadd [#allocation3], 4294967168 }
   0xa   :  { %509 = dma.done.wait [#allocation6], 256  }
   0xb   :  { %510 = vsyncadd [#allocation6], 4294967040  ;;  %v402_v0 = vld [vmem:[#allocation5 + $0x8] sm:$0xff]  ;;  %v401_v1 = vld [vmem:[#allocation5] sm:$0xff]  ;;  %vm83_vm0 = vcmask 261120   ;;  %vm280_vm3 = vcmask 130048  }
   0xc   :  { %v410_v2 = vld [vmem:[%s639_s4 + $0x38] sm:$0xff]  ;;  %93 = vmatpush.bf16.msra.mxu0 %v402_v0  ;;  %v61_v3 = vld [vmem:[%s635_s0] sm:$0xff]  ;;  %v409_v4 = vld [vmem:[%s639_s4 + $0x30] sm:$0xff]  ;;  %s315_s28 = sshll.u32 %s643_s8, 4  ;;  %s316_s28 = int_to_ptr.hbm [resolvable:$true] %s315_s28 }
   0xd   :  { %175 = vmatpush.bf16.msra.mxu1 %v410_v2  ;;  %v62_v5 = vpack.c.bf16 %v61_v3, %v61_v3  ;;  %v408_v6 = vld [vmem:[%s639_s4 + $0x28] sm:$0xff]  ;;  %v407_v7 = vld [vmem:[%s639_s4 + $0x20] sm:$0xff]  ;;  %v406_v8 = vld [vmem:[%s639_s4 + $0x18] sm:$0xff] }
   0xe   :  { %v405_v9 = vld [vmem:[%s639_s4 + $0x10] sm:$0xff]  ;;  %v404_v10 = vld [vmem:[%s639_s4 + $0x8] sm:$0xff]  ;;  %v403_v11 = vld [vmem:[%s639_s4] sm:$0xff] }
   0xf   :  { %v418_v12 = vld [vmem:[%s641_s6 + $0x38] sm:$0xff]  ;;  %v417_v13 = vld [vmem:[%s641_s6 + $0x30] sm:$0xff]  ;;  %v416_v14 = vld [vmem:[%s641_s6 + $0x28] sm:$0xff] }
  0x10   :  { %94 = vmatpush.bf16.msra.mxu0 %v401_v1  ;;  %263 = vmatpush.bf16.msra.mxu2 %v418_v12  ;;  %v424_v15 = vld [vmem:[%s638_s3] ss:$0 sm:$0xff]  ;;  %v414_v26 = vld [vmem:[%s641_s6 + $0x18] sm:$0xff]  ;;  %v413_v27 = vld [vmem:[%s641_s6 + $0x10] sm:$0xff] }
  0x11   :  { %176 = vmatpush.bf16.msra.mxu1 %v409_v4  ;;  %v415_v25 = vld [vmem:[%s641_s6 + $0x20] sm:$0xff]  ;;  %v412_v28 = vld [vmem:[%s641_s6 + $0x8] sm:$0xff] }
  0x12   :  { %v411_v29 = vld [vmem:[%s641_s6] sm:$0xff] }
  0x13   :  { %334 = vmatmul.msk.bf16.vlgmr.msra.gmra.mxu0 %vm83_vm0, %v62_v5  ;;  %v425_v30 = vld [vmem:[%s640_s5] ss:$0 sm:$0xff]  ;;  %s517_s5 = smov [#allocation7]  }
  0x14   :  { %264 = vmatpush.bf16.msra.mxu2 %v417_v13  ;;  %v276_v40 = vld [vmem:[#allocation2] sm:$0xff] }
  0x15   :  { %177 = vmatpush.bf16.msra.mxu1 %v408_v6  ;;  %v277_v41 = vsub.f32 1.0, %v276_v40  ;;  %v426_v42 = vld [vmem:[%s642_s7] ss:$0 sm:$0xff]  ;;  %v305_v63 = vmul.f32 1e-09, %v276_v40  ;;  %s313_s7 = sshll.u32 %s517_s5, 4  ;;  %s314_s7 = int_to_ptr.vmem [resolvable:$true] %s313_s7 }
  0x17   :  { %v278_v43 = vmul.f32 -1e+09, %v277_v41 }
  0x18   :  { %265 = vmatpush.bf16.msra.mxu2 %v416_v14 }
  0x19   :  { %178 = vmatpush.bf16.msra.mxu1 %v407_v7 }
  0x1c   :  { %266 = vmatpush.bf16.msra.mxu2 %v415_v25 }
  0x1d   :  { %179 = vmatpush.bf16.msra.mxu1 %v406_v8 }
  0x20   :  { %267 = vmatpush.bf16.msra.mxu2 %v414_v26 }
  0x21   :  { %180 = vmatpush.bf16.msra.mxu1 %v405_v9 }
  0x24   :  { %268 = vmatpush.bf16.msra.mxu2 %v413_v27 }
  0x25   :  { %181 = vmatpush.bf16.msra.mxu1 %v404_v10 }
  0x28   :  { %269 = vmatpush.bf16.msra.mxu2 %v412_v28 }
  0x29   :  { %182 = vmatpush.bf16.msra.mxu1 %v403_v11 }
  0x2c   :  { %270 = vmatpush.bf16.msra.mxu2 %v411_v29 }
  0x90   :  { %v96_v16 = vpop.f32.mrf.mxu0 }
  0x91   :  { %v97_v17 = vadd.f32 %v424_v15, %v96_v16 }
  0x93   :  { %v101_v18 = vmin.f32 %v97_v17, 0.0  ;;  %vm100_vm1 = vcmp.gt.f32.partialorder %v97_v17, 0.0 }
  0x95   :  { %v102_v19 = vmul.f32 1.442695, %v101_v18 }
  0x97   :  { %427 = vpow2.f32 %v102_v19 }
  0x98   :  { %v98_v20 = vpop.f32.mrf.mxu0 }
  0x9d   :  { %v428_v21 = vpop.eup %427 }
  0x9e   :  { %v335_v22 = vadd.f32 -1.0, %v428_v21 }
  0xa0   :  { %v105_v23 = vsel %vm100_vm1, %v97_v17, %v335_v22 }
  0xa1   :  { %v106_v24 = vpack.c.bf16 %v105_v23, %v105_v23 }
  0xa3   :  { %183 = vmatmul.bf16.vlgmr.msra.gmra.mxu1 %v106_v24 }
 0x120   :  { %v184_v31 = vpop.f32.mrf.mxu1 }
 0x121   :  { %v185_v32 = vadd.f32 %v425_v30, %v184_v31 }
 0x123   :  { %v189_v33 = vmin.f32 %v185_v32, 0.0  ;;  %vm188_vm2 = vcmp.gt.f32.partialorder %v185_v32, 0.0 }
 0x125   :  { %v190_v34 = vmul.f32 1.442695, %v189_v33 }
 0x127   :  { %429 = vpow2.f32 %v190_v34 }
 0x128   :  { %v186_v35 = vpop.f32.mrf.mxu1 }
 0x12d   :  { %v430_v36 = vpop.eup %429 }
 0x12e   :  { %v368_v37 = vadd.f32 -1.0, %v430_v36 }
 0x130   :  { %v193_v38 = vsel %vm188_vm2, %v185_v32, %v368_v37 }
 0x131   :  { %v194_v39 = vpack.c.bf16 %v193_v38, %v193_v38 }
 0x133   :  { %271 = vmatmul.bf16.vlgmr.msra.gmra.mxu2 %v194_v39 }
 0x1b6   :  { %v272_v44 = vpop.f32.mrf.mxu2 }
 0x1b7   :  { %v273_v45 = vadd.f32 %v426_v42, %v272_v44 }
 0x1b9   :  { %v279_v46 = vadd.f32 %v278_v43, %v273_v45 }
 0x1bb   :  { %v281_v47 = vsel %vm280_vm3, %v279_v46, -inf }
 0x1bc   :  { %282 = vmax.xlane.f32.xlu0 %v281_v47 }
 0x1be   :  { %v274_v48 = vpop.f32.mrf.mxu2 }
 0x22f   :  { %v283_v49 = vpop.xlane.xlu0 %282 }
 0x230   :  { %v284_v50 = vsub.f32 %v279_v46, %v283_v49 }
 0x232   :  { %v285_v51 = vmul.f32 1.442695, %v284_v50 }
 0x234   :  { %431 = vpow2.f32 %v285_v51 }
 0x23a   :  { %v432_v52 = vpop.eup %431 }
 0x23b   :  { %v287_v53 = vsel %vm280_vm3, %v432_v52, 0.0 }
 0x23c   :  { %288 = vadd.xlane.f32.xlu0 %v287_v53 }
 0x2af   :  { %v289_v54 = vpop.xlane.xlu0 %288 }
 0x2b0   :  { %433 = vrcp.f32 %v289_v54  ;;  %v301_v58 = vand.u32 2147483648, %v289_v54  ;;  %v299_v60 = vand.u32 2147483647, %v289_v54  ;;  %vm295_vm5 = vweird.f32 %v289_v54 }
 0x2b2   :  { %v302_v62 = vor.u32 1.1754944e-38, %v301_v58  ;;  %vm300_vm7 = vcmp.eq.f32.partialorder %v299_v60, 8.507059e+37 }
 0x2b6   :  { %v434_v55 = vpop.eup %433 }
 0x2b7   :  { %v291_v56 = vmul.f32 %v434_v55, %v289_v54  ;;  %vm296_vm4 = vweird.f32 %v434_v55 }
 0x2b8   :  { %vm297_vm6 = vmor %vm295_vm5, %vm296_vm4 }
 0x2b9   :  { %v292_v57 = vsub.f32 1.0, %v291_v56 }
 0x2bb   :  { %v293_v59 = vmul.f32 %v434_v55, %v292_v57 }
 0x2bd   :  { %v294_v61 = vadd.f32 %v434_v55, %v293_v59 }
 0x2bf   :  { %v298_v0 = vsel %vm297_vm6, %v434_v55, %v294_v61 }
 0x2c0   :  { %v303_v1 = vsel %vm300_vm7, %v302_v62, %v298_v0 }
 0x2c1   :  { %v304_v2 = vmul.f32 %v432_v52, %v303_v1 }
 0x2c3   :  { %v306_v3 = vadd.f32 %v305_v63, %v304_v2 }
 0x2c5   :  { %307 = vst.msk [vmem:[#allocation7] sm:$0xff] %vm280_vm3, %v306_v3 }
 0x2c6   :  { %318 = dma.vmem_to_hbm [thread:$0]  %s314_s7, 128, %s316_s28, [#allocation4]  }
 0x2c7   :  { %511 = dma.done.wait [#allocation4], 128  }
 0x2c8   :  { %512 = vsyncadd [#allocation4], 4294967168 }
 0x2c9   :  { %323 = vsyncpa [#allocation3], 1 }
 0x2ca   :  { %324 = vsyncpa [#allocation6], 1 }
 0x2cb   :  { %325 = vsyncpa [#allocation4], 1 }

</bundles_post_ra>
